<compile_context>
chip_gen: v7x
topology: tpu7x:2x2x1
jax: 0.10.0
libtpu: 0.0.40
codegen_flags: <defaults>
</compile_context>

<pallas_src>
import functools

import jax
import jax.numpy as jnp
from jax import lax
from jax.experimental import pallas as pl
from jax.experimental.pallas import tpu as pltpu

LAMBDA_ = 0.5    # self.lambda_
TEMP = 4.0       # self.temp
EPS = 1e-12      # pdist clamp epsilon (standard RKD pdist helper)


def rkd_kernel(s_ref, t_ref, lbl_ref, o_ref, *, lambda_, temp):
    s_logits = s_ref[...].astype(jnp.float32)      # (B, C)
    t_logits = t_ref[...].astype(jnp.float32)      # (B, C)
    labels = lbl_ref[...]                          # (B, 1) int32
    B, C = s_logits.shape
    N = 2 * B

    # soft_student_logits = log_softmax(student / temp, dim=1)
    ss = s_logits * (1.0 / temp)
    ss = ss - jnp.max(ss, axis=1, keepdims=True)
    log_soft_s = ss - jnp.log(jnp.sum(jnp.exp(ss), axis=1, keepdims=True))

    # soft_teacher_logits = softmax(teacher / temp, dim=1)
    tt = t_logits * (1.0 / temp)
    tt = tt - jnp.max(tt, axis=1, keepdims=True)
    et = jnp.exp(tt)
    soft_t = et * (1.0 / jnp.sum(et, axis=1, keepdims=True))

    # --- fused pairwise distances (teacher + student in one MXU gram matmul) ---
    # Pairwise distances are translation invariant, so center each block (subtract its
    # per-column mean) to kill the |ei|^2 + |ej|^2 - 2 ei.ej cancellation; result unchanged.
    soft_t_c = soft_t - jnp.mean(soft_t, axis=0, keepdims=True)
    log_s_c = log_soft_s - jnp.mean(log_soft_s, axis=0, keepdims=True)
    e = jnp.concatenate([soft_t_c, log_s_c], axis=0)                      # (2B, C)

    # Gram matrix on the MXU, contracting dim 1 of both operands (no e.T materialized).
    prod = lax.dot_general(
        e, e, dimension_numbers=(((1,), (1,)), ((), ())),
        preferred_element_type=jnp.float32)                               # (2B, 2B)

    row = lax.broadcasted_iota(jnp.int32, (N, N), 0)
    col = lax.broadcasted_iota(jnp.int32, (N, N), 1)
    diag = row == col
    # |e_i|^2 sits on the gram diagonal; pull it out as a column and a row via masked
    # reductions instead of a transpose.
    diag_vals = jnp.where(diag, prod, 0.0)
    sq_col = jnp.sum(diag_vals, axis=1, keepdims=True)                    # (2B, 1)
    sq_row = jnp.sum(diag_vals, axis=0, keepdims=True)                    # (1, 2B)

    dist2 = sq_col + sq_row - 2.0 * prod
    dist = jnp.sqrt(jnp.maximum(dist2, EPS))
    dist = jnp.where(diag, 0.0, dist)                                     # zero diagonal

    t_d = dist[:B, :B]     # teacher pairwise distances
    d = dist[B:, B:]       # student pairwise distances

    # mean over positive entries: diagonal is exactly 0, off-diagonal >= sqrt(EPS) > 0,
    # so the positive count is statically B*(B-1). Normalize with reciprocal-multiply.
    npos = float(B * (B - 1))
    t_d = t_d * (npos / jnp.sum(t_d))
    d = d * (npos / jnp.sum(d))

    # smooth_l1_loss(d, t_d, reduction='elementwise_mean')  (beta = 1.0)
    diff = d - t_d
    ad = jnp.abs(diff)
    sl1 = jnp.where(ad < 1.0, 0.5 * diff * diff, ad - 0.5)
    rkd = jnp.sum(sl1) * (1.0 / (B * B))

    # cross_entropy(student_logits, labels) on the UNscaled logits; labels via iota compare.
    m = jnp.max(s_logits, axis=1, keepdims=True)
    lse = m + jnp.log(jnp.sum(jnp.exp(s_logits - m), axis=1, keepdims=True))        # (B, 1)
    cls = lax.broadcasted_iota(jnp.int32, (B, C), 1)
    picked = jnp.sum(jnp.where(cls == labels, s_logits, 0.0), axis=1, keepdims=True)  # (B, 1)
    ce = jnp.sum(lse - picked) * (1.0 / B)

    o_ref[0, 0] = rkd * lambda_ + ce


@functools.partial(jax.jit, static_argnames=("lambda_", "temp"))
def rkd_distance_loss(student_logits, teacher_logits, labels, *, lambda_=LAMBDA_, temp=TEMP):
    B, C = student_logits.shape
    labels2d = labels.astype(jnp.int32).reshape(B, 1)   # tiny (B,1) int32 instead of one-hot
    kernel = functools.partial(rkd_kernel, lambda_=float(lambda_), temp=float(temp))
    out = pl.pallas_call(
        kernel,
        out_shape=jax.ShapeDtypeStruct((1, 1), jnp.float32),
        in_specs=[
            pl.BlockSpec(memory_space=pltpu.MemorySpace.VMEM),   # student logits (native dtype)
            pl.BlockSpec(memory_space=pltpu.MemorySpace.VMEM),   # teacher logits (native dtype)
            pl.BlockSpec(memory_space=pltpu.MemorySpace.VMEM),   # labels (B,1) int32
        ],
        out_specs=pl.BlockSpec(memory_space=pltpu.MemorySpace.SMEM),
        compiler_params=pltpu.CompilerParams(vmem_limit_bytes=32 * 1024 * 1024),
    )(student_logits, teacher_logits, labels2d)
    return out[0, 0]


def _reference(student_logits, teacher_logits, labels, lambda_=LAMBDA_, temp=TEMP):
    """Pure-JAX reference mirroring the PyTorch forward."""
    def pdist(e):
        sq = jnp.sum(e * e, axis=1)
        prod = jnp.matmul(e, e.T, precision=jax.lax.Precision.HIGHEST)
        res = sq[:, None] + sq[None, :] - 2.0 * prod
        res = jnp.sqrt(jnp.maximum(res, EPS))
        return res * (1.0 - jnp.eye(e.shape[0], dtype=res.dtype))

    s = student_logits.astype(jnp.float32)
    t = teacher_logits.astype(jnp.float32)
    log_soft_s = jax.nn.log_softmax(s / temp, axis=1)
    soft_t = jax.nn.softmax(t / temp, axis=1)
    t_d = pdist(soft_t)
    t_d = t_d / (jnp.sum(jnp.where(t_d > 0, t_d, 0.0)) / jnp.sum(t_d > 0))
    d = pdist(log_soft_s)
    d = d / (jnp.sum(jnp.where(d > 0, d, 0.0)) / jnp.sum(d > 0))
    diff = d - t_d
    sl1 = jnp.where(jnp.abs(diff) < 1.0, 0.5 * diff * diff, jnp.abs(diff) - 0.5)
    rkd = jnp.mean(sl1)
    logp = jax.nn.log_softmax(s, axis=1)
    ce = -jnp.mean(jnp.take_along_axis(logp, labels[:, None], axis=1))
    return rkd * lambda_ + ce


if __name__ == "__main__":
    key = jax.random.PRNGKey(0)
    k1, k2, k3 = jax.random.split(key, 3)
    B, C = 8, 32                                      # batch of logits [B, C]
    student = jax.random.normal(k1, (B, C), dtype=jnp.float32)
    teacher = jax.random.normal(k2, (B, C), dtype=jnp.float32)
    labels = jax.random.randint(k3, (B,), 0, C, dtype=jnp.int32)

    loss = rkd_distance_loss(student, teacher, labels)
    jax.block_until_ready(loss)

    ref = _reference(student, teacher, labels)
    assert jnp.allclose(loss, ref, rtol=1e-4, atol=1e-5), (loss, ref)
    print("KERNEL_OK")
</pallas_src>

<mosaic_0001>
module attributes {stable_mosaic.version = 11 : i64} {
  func.func @rkd_kernel(%arg0: memref<8x32xf32, #tpu.memory_space<vmem>>, %arg1: memref<8x32xf32, #tpu.memory_space<vmem>>, %arg2: memref<8x1xi32, #tpu.memory_space<vmem>>, %arg3: memref<1x1xf32, #tpu.memory_space<smem>>) attributes {dimension_semantics = [], scalar_prefetch = 0 : i64, scratch_operands = 0 : i64, tpu.core_type = #tpu.core_type<tc>} {
    %c0 = arith.constant 0 : index
    %c0_0 = arith.constant 0 : index
    %0 = vector.load %arg0[%c0, %c0_0] : memref<8x32xf32, #tpu.memory_space<vmem>>, vector<8x32xf32>
    %c0_1 = arith.constant 0 : index
    %c0_2 = arith.constant 0 : index
    %1 = vector.load %arg1[%c0_1, %c0_2] : memref<8x32xf32, #tpu.memory_space<vmem>>, vector<8x32xf32>
    %c0_3 = arith.constant 0 : index
    %c0_4 = arith.constant 0 : index
    %2 = vector.load %arg2[%c0_3, %c0_4] : memref<8x1xi32, #tpu.memory_space<vmem>>, vector<8x1xi32>
    %cst = arith.constant 2.500000e-01 : f32
    %3 = vector.broadcast %cst : f32 to vector<8x32xf32>
    %4 = arith.mulf %0, %3 : vector<8x32xf32>
    %cst_5 = arith.constant dense<0xFF800000> : vector<8xf32>
    %5 = vector.multi_reduction <maximumf>, %4, %cst_5 [1] : vector<8x32xf32> to vector<8xf32>
    %6 = vector.shape_cast %5 : vector<8xf32> to vector<8x1xf32>
    %7 = vector.broadcast %6 : vector<8x1xf32> to vector<8x32xf32>
    %8 = arith.subf %4, %7 : vector<8x32xf32>
    %9 = math.exp %8 : vector<8x32xf32>
    %cst_6 = arith.constant dense<0.000000e+00> : vector<8xf32>
    %10 = vector.multi_reduction <add>, %9, %cst_6 [1] : vector<8x32xf32> to vector<8xf32>
    %11 = vector.shape_cast %10 : vector<8xf32> to vector<8x1xf32>
    %12 = math.log %11 : vector<8x1xf32>
    %13 = vector.broadcast %12 : vector<8x1xf32> to vector<8x32xf32>
    %14 = arith.subf %8, %13 : vector<8x32xf32>
    %cst_7 = arith.constant 2.500000e-01 : f32
    %15 = vector.broadcast %cst_7 : f32 to vector<8x32xf32>
    %16 = arith.mulf %1, %15 : vector<8x32xf32>
    %cst_8 = arith.constant dense<0xFF800000> : vector<8xf32>
    %17 = vector.multi_reduction <maximumf>, %16, %cst_8 [1] : vector<8x32xf32> to vector<8xf32>
    %18 = vector.shape_cast %17 : vector<8xf32> to vector<8x1xf32>
    %19 = vector.broadcast %18 : vector<8x1xf32> to vector<8x32xf32>
    %20 = arith.subf %16, %19 : vector<8x32xf32>
    %21 = math.exp %20 : vector<8x32xf32>
    %cst_9 = arith.constant dense<0.000000e+00> : vector<8xf32>
    %22 = vector.multi_reduction <add>, %21, %cst_9 [1] : vector<8x32xf32> to vector<8xf32>
    %23 = vector.shape_cast %22 : vector<8xf32> to vector<8x1xf32>
    %cst_10 = arith.constant 1.000000e+00 : f32
    %24 = vector.broadcast %cst_10 : f32 to vector<8x1xf32>
    %25 = arith.divf %24, %23 : vector<8x1xf32>
    %26 = vector.broadcast %25 : vector<8x1xf32> to vector<8x32xf32>
    %27 = arith.mulf %21, %26 : vector<8x32xf32>
    %cst_11 = arith.constant dense<0.000000e+00> : vector<32xf32>
    %28 = vector.multi_reduction <add>, %27, %cst_11 [0] : vector<8x32xf32> to vector<32xf32>
    %29 = vector.shape_cast %28 : vector<32xf32> to vector<1x32xf32>
    %cst_12 = arith.constant 8.000000e+00 : f32
    %30 = vector.broadcast %cst_12 : f32 to vector<1x32xf32>
    %31 = arith.divf %29, %30 : vector<1x32xf32>
    %32 = vector.broadcast %31 : vector<1x32xf32> to vector<8x32xf32>
    %33 = arith.subf %27, %32 : vector<8x32xf32>
    %cst_13 = arith.constant dense<0.000000e+00> : vector<32xf32>
    %34 = vector.multi_reduction <add>, %14, %cst_13 [0] : vector<8x32xf32> to vector<32xf32>
    %35 = vector.shape_cast %34 : vector<32xf32> to vector<1x32xf32>
    %cst_14 = arith.constant 8.000000e+00 : f32
    %36 = vector.broadcast %cst_14 : f32 to vector<1x32xf32>
    %37 = arith.divf %35, %36 : vector<1x32xf32>
    %38 = vector.broadcast %37 : vector<1x32xf32> to vector<8x32xf32>
    %39 = arith.subf %14, %38 : vector<8x32xf32>
    %40 = tpu.concatenate %33, %39 in 0 : vector<8x32xf32>, vector<8x32xf32> -> vector<16x32xf32>
    %cst_15 = arith.constant dense<0.000000e+00> : vector<16x16xf32>
    %41 = tpu.matmul %40, %40, %cst_15 {dimension_numbers = #tpu.dot_dimension_numbers<[1], [1], [0], [0], [0, 0, 1, 0], [], []>} : vector<16x32xf32>, vector<16x32xf32>, vector<16x16xf32> -> vector<16x16xf32>
    %42 = tpu.iota {dimensions = array<i32: 0>} : vector<16x16xi32>
    %43 = tpu.iota {dimensions = array<i32: 1>} : vector<16x16xi32>
    %44 = arith.cmpi eq, %42, %43 : vector<16x16xi32>
    %cst_16 = arith.constant 0.000000e+00 : f32
    %45 = vector.broadcast %cst_16 : f32 to vector<16x16xf32>
    %46 = arith.select %44, %41, %45 : vector<16x16xi1>, vector<16x16xf32>
    %cst_17 = arith.constant dense<0.000000e+00> : vector<16xf32>
    %47 = vector.multi_reduction <add>, %46, %cst_17 [1] : vector<16x16xf32> to vector<16xf32>
    %48 = vector.shape_cast %47 : vector<16xf32> to vector<16x1xf32>
    %cst_18 = arith.constant dense<0.000000e+00> : vector<16xf32>
    %49 = vector.multi_reduction <add>, %46, %cst_18 [0] : vector<16x16xf32> to vector<16xf32>
    %50 = vector.shape_cast %49 : vector<16xf32> to vector<1x16xf32>
    %51 = vector.broadcast %48 : vector<16x1xf32> to vector<16x16xf32>
    %52 = vector.broadcast %50 : vector<1x16xf32> to vector<16x16xf32>
    %53 = arith.addf %51, %52 : vector<16x16xf32>
    %cst_19 = arith.constant 2.000000e+00 : f32
    %54 = vector.broadcast %cst_19 : f32 to vector<16x16xf32>
    %55 = arith.mulf %54, %41 : vector<16x16xf32>
    %56 = arith.subf %53, %55 : vector<16x16xf32>
    %cst_20 = arith.constant 9.99999996E-13 : f32
    %57 = vector.broadcast %cst_20 : f32 to vector<16x16xf32>
    %58 = arith.maximumf %56, %57 : vector<16x16xf32>
    %59 = math.sqrt %58 : vector<16x16xf32>
    %cst_21 = arith.constant 0.000000e+00 : f32
    %60 = vector.broadcast %cst_21 : f32 to vector<16x16xf32>
    %61 = arith.select %44, %60, %59 : vector<16x16xi1>, vector<16x16xf32>
    %62 = vector.extract_strided_slice %61 {offsets = [0, 0], sizes = [8, 8], strides = [1, 1]} : vector<16x16xf32> to vector<8x8xf32>
    %63 = vector.extract_strided_slice %61 {offsets = [8, 8], sizes = [8, 8], strides = [1, 1]} : vector<16x16xf32> to vector<8x8xf32>
    %64 = vector.shape_cast %62 : vector<8x8xf32> to vector<1x8x8xf32>
    %cst_22 = arith.constant dense<0.000000e+00> : vector<1xf32>
    %65 = vector.multi_reduction <add>, %64, %cst_22 [1, 2] : vector<1x8x8xf32> to vector<1xf32>
    %66 = vector.shape_cast %65 : vector<1xf32> to vector<1x1x1xf32>
    %67 = vector.extract %66[0, 0, 0] : f32 from vector<1x1x1xf32>
    %cst_23 = arith.constant 5.600000e+01 : f32
    %68 = arith.divf %cst_23, %67 : f32
    %69 = vector.broadcast %68 : f32 to vector<8x8xf32>
    %70 = arith.mulf %62, %69 : vector<8x8xf32>
    %71 = vector.shape_cast %63 : vector<8x8xf32> to vector<1x8x8xf32>
    %cst_24 = arith.constant dense<0.000000e+00> : vector<1xf32>
    %72 = vector.multi_reduction <add>, %71, %cst_24 [1, 2] : vector<1x8x8xf32> to vector<1xf32>
    %73 = vector.shape_cast %72 : vector<1xf32> to vector<1x1x1xf32>
    %74 = vector.extract %73[0, 0, 0] : f32 from vector<1x1x1xf32>
    %cst_25 = arith.constant 5.600000e+01 : f32
    %75 = arith.divf %cst_25, %74 : f32
    %76 = vector.broadcast %75 : f32 to vector<8x8xf32>
    %77 = arith.mulf %63, %76 : vector<8x8xf32>
    %78 = arith.subf %77, %70 : vector<8x8xf32>
    %79 = math.absf %78 : vector<8x8xf32>
    %cst_26 = arith.constant 1.000000e+00 : f32
    %80 = vector.broadcast %cst_26 : f32 to vector<8x8xf32>
    %81 = arith.cmpf olt, %79, %80 : vector<8x8xf32>
    %cst_27 = arith.constant 5.000000e-01 : f32
    %82 = vector.broadcast %cst_27 : f32 to vector<8x8xf32>
    %83 = arith.mulf %82, %78 : vector<8x8xf32>
    %84 = arith.mulf %83, %78 : vector<8x8xf32>
    %cst_28 = arith.constant 5.000000e-01 : f32
    %85 = vector.broadcast %cst_28 : f32 to vector<8x8xf32>
    %86 = arith.subf %79, %85 : vector<8x8xf32>
    %87 = arith.select %81, %84, %86 : vector<8x8xi1>, vector<8x8xf32>
    %88 = vector.shape_cast %87 : vector<8x8xf32> to vector<1x8x8xf32>
    %cst_29 = arith.constant dense<0.000000e+00> : vector<1xf32>
    %89 = vector.multi_reduction <add>, %88, %cst_29 [1, 2] : vector<1x8x8xf32> to vector<1xf32>
    %90 = vector.shape_cast %89 : vector<1xf32> to vector<1x1x1xf32>
    %91 = vector.extract %90[0, 0, 0] : f32 from vector<1x1x1xf32>
    %cst_30 = arith.constant 1.562500e-02 : f32
    %92 = arith.mulf %91, %cst_30 : f32
    %cst_31 = arith.constant dense<0xFF800000> : vector<8xf32>
    %93 = vector.multi_reduction <maximumf>, %0, %cst_31 [1] : vector<8x32xf32> to vector<8xf32>
    %94 = vector.shape_cast %93 : vector<8xf32> to vector<8x1xf32>
    %95 = vector.broadcast %94 : vector<8x1xf32> to vector<8x32xf32>
    %96 = arith.subf %0, %95 : vector<8x32xf32>
    %97 = math.exp %96 : vector<8x32xf32>
    %cst_32 = arith.constant dense<0.000000e+00> : vector<8xf32>
    %98 = vector.multi_reduction <add>, %97, %cst_32 [1] : vector<8x32xf32> to vector<8xf32>
    %99 = vector.shape_cast %98 : vector<8xf32> to vector<8x1xf32>
    %100 = math.log %99 : vector<8x1xf32>
    %101 = arith.addf %94, %100 : vector<8x1xf32>
    %102 = tpu.iota {dimensions = array<i32: 1>} : vector<8x32xi32>
    %103 = vector.broadcast %2 : vector<8x1xi32> to vector<8x32xi32>
    %104 = arith.cmpi eq, %102, %103 : vector<8x32xi32>
    %cst_33 = arith.constant 0.000000e+00 : f32
    %105 = vector.broadcast %cst_33 : f32 to vector<8x32xf32>
    %106 = arith.select %104, %0, %105 : vector<8x32xi1>, vector<8x32xf32>
    %cst_34 = arith.constant dense<0.000000e+00> : vector<8xf32>
    %107 = vector.multi_reduction <add>, %106, %cst_34 [1] : vector<8x32xf32> to vector<8xf32>
    %108 = vector.shape_cast %107 : vector<8xf32> to vector<8x1xf32>
    %109 = arith.subf %101, %108 : vector<8x1xf32>
    %110 = vector.shape_cast %109 : vector<8x1xf32> to vector<1x8x1xf32>
    %cst_35 = arith.constant dense<0.000000e+00> : vector<1xf32>
    %111 = vector.multi_reduction <add>, %110, %cst_35 [1, 2] : vector<1x8x1xf32> to vector<1xf32>
    %112 = vector.shape_cast %111 : vector<1xf32> to vector<1x1x1xf32>
    %113 = vector.extract %112[0, 0, 0] : f32 from vector<1x1x1xf32>
    %cst_36 = arith.constant 1.250000e-01 : f32
    %114 = arith.mulf %113, %cst_36 : f32
    %cst_37 = arith.constant 5.000000e-01 : f32
    %115 = arith.mulf %92, %cst_37 : f32
    %116 = arith.addf %115, %114 : f32
    %c0_38 = arith.constant 0 : index
    %c0_39 = arith.constant 0 : index
    %117 = memref.load %arg3[%c0_38, %c0_39] : memref<1x1xf32, #tpu.memory_space<smem>>
    memref.store %116, %arg3[%c0_38, %c0_39] : memref<1x1xf32, #tpu.memory_space<smem>>
    return
  }
}

</mosaic_0001>

<bundles_post_ra>
// kernel: rkd_distance_loss.1
= control target key start
LH: loop header
LB: loop body
LE: loop exit
PB: predicated region body
PF: predicated region fallthrough
CT: control target
= control target key end

     0   :  { %vm19_vm0 = vcmask 261120   ;;  %s462_s0 = inlined_call_operand.vmem [shape: f32[8,32], index: 0, kind: input, shape index: {}]   ;;  %s463_s1 = inlined_call_operand.vmem [shape: f32[8,32], index: 1, kind: input, shape index: {}]   ;;  %s464_s2 = inlined_call_operand.vmem [shape: s32[8,1], index: 2, kind: input, shape index: {}]   ;;  %s465_s3 = inlined_call_operand.hbm [shape: f32[1,1], index: 3, kind: output, shape index: {}]  }
   0x1   :  { %v403_v0 = vld [vmem:[%s462_s0] sm:$0xff] }
   0x2   :  { %v16_v1 = vld [vmem:[%s463_s1] sm:$0xff] }
   0x3   :  { %8 = vsyncpa [#allocation3], 0  ;;  %v18_v2 = vmul.f32 0.25, %v403_v0  ;;  %v32_v3 = vmul.f32 0.25, %v16_v1  ;;  %v145_v42 = vlaneseq  ;;  %vm154_vm4 = vcmask 130048   ;;  %s376_s0 = smov 120  }
   0x4   :  { %vm322_vm1 = vmpackc.low %vm19_vm0, %vm19_vm0  ;;  %vm192_vm9 = vcmask 64512   ;;  %s378_s19 = smov 8   ;;  %vm276_vm12 = vcmask 7168   ;;  %s364_s4 = scalar_lea.hbm %s465_s3, 16 }
   0x5   :  { %v20_v4 = vsel %vm19_vm0, %v18_v2, -inf  ;;  %v33_v5 = vsel %vm19_vm0, %v32_v3, -inf  ;;  %v146_v43 = vshrl.u32 %v145_v42, 7  ;;  %v419_v44 = vand.u32 127, %v145_v42  ;;  %p365_p0 = scmp.ne.s32.totalorder %s465_s3, %s364_s4  ;;  %p368_p1 = scmp.lt.u32.totalorder %s364_s4, %s465_s3 }
   0x6   :  { %21 = vmax.xlane.f32.xlu0 %v20_v4 }
   0x7   :  { %v147_v45 = vadd.s32 8, %v146_v43  ;;  %vm150_vm3 = vcmp.eq.s32.totalorder %v146_v43, %v419_v44  ;;  %p370_p2 = pnand %p368_p1, %p365_p0 }
   0x9   :  { %vm151_vm2 = vcmp.eq.s32.totalorder %v147_v45, %v419_v44 }
   0xa   :  { %34 = vmax.xlane.f32.xlu0 %v33_v5 }
  0x93   :  { %v22_v6 = vpop.xlane.xlu0 %21 }
  0x94   :  { %v23_v7 = vsub.f32 %v18_v2, %v22_v6 }
  0x96   :  { %v24_v8 = vmul.f32 1.442695, %v23_v7 }
  0x97   :  { %v35_v9 = vpop.xlane.xlu0 %34 }
  0x98   :  { %344 = vpow2.f32 %v24_v8  ;;  %v36_v10 = vsub.f32 %v32_v3, %v35_v9 }
  0x9a   :  { %v37_v11 = vmul.f32 1.442695, %v36_v10 }
  0x9c   :  { %346 = vpow2.f32 %v37_v11 }
  0xa2   :  { %v345_v12 = vpop.eup %344 }
  0xa3   :  { %v26_v13 = vsel %vm19_vm0, %v345_v12, 0.0 }
  0xa4   :  { %27 = vadd.xlane.f32.xlu1 %v26_v13 }
  0xa6   :  { %v347_v14 = vpop.eup %346 }
  0xa7   :  { %v39_v15 = vsel %vm19_vm0, %v347_v14, 0.0 }
  0xa8   :  { %40 = vadd.xlane.f32.xlu1 %v39_v15 }
 0x131   :  { %v28_v16 = vpop.xlane.xlu1 %27 }
 0x132   :  { %348 = vlog2.f32 %v28_v16 }
 0x135   :  { %v41_v17 = vpop.xlane.xlu1 %40 }
 0x136   :  { %350 = vrcp.f32 %v41_v17 }
 0x13c   :  { %v349_v18 = vpop.eup %348 }
 0x13d   :  { %v30_v19 = vmul.f32 0.6931472, %v349_v18 }
 0x13f   :  { %v31_v20 = vsub.f32 %v23_v7, %v30_v19  ;;  %v377_v19 = vmov 0  }
 0x140   :  { %v351_v21 = vpop.eup %350  ;;  %343 = vset.pattern.permute.xlu0 %v377_v19 }
 0x141   :  { %v55_v22 = vsel %vm19_vm0, %v31_v20, 0.0  ;;  %v44_v23 = vmul.f32 %v351_v21, %v347_v14 }
 0x142   :  { %v56_v24 = vrot.slane %v55_v22, 4 }
 0x143   :  { %v45_v25 = vsel %vm19_vm0, %v44_v23, 0.0 }
 0x144   :  { %v57_v26 = vadd.f32 %v56_v24, %v55_v22  ;;  %v46_v27 = vrot.slane %v45_v25, 4  ;;  %v255_v22 = vsel %vm19_vm0, %v403_v0, -inf }
 0x146   :  { %v47_v28 = vadd.f32 %v46_v27, %v45_v25  ;;  %v58_v29 = vrot.slane %v57_v26, 2 }
 0x148   :  { %v48_v30 = vrot.slane %v47_v28, 2  ;;  %v59_v31 = vadd.f32 %v58_v29, %v57_v26 }
 0x14a   :  { %v49_v32 = vadd.f32 %v48_v30, %v47_v28  ;;  %v60_v33 = vrot.slane %v59_v31, 1 }
 0x14c   :  { %v50_v34 = vrot.slane %v49_v32, 1  ;;  %v61_v35 = vadd.f32 %v60_v33, %v59_v31 }
 0x14e   :  { %v51_v36 = vadd.f32 %v50_v34, %v49_v32  ;;  %v62_v37 = vmul.f32 0.125, %v61_v35 }
 0x150   :  { %v53_v38 = vmul.f32 0.125, %v51_v36  ;;  %v63_v40 = vsub.f32 %v31_v20, %v62_v37 }
 0x152   :  { %v54_v39 = vsub.f32 %v44_v23, %v53_v38  ;;  %v17_v23 = vld [vmem:[%s464_s2] sm:$0xff] }
 0x154   :  { %318 = vmatprep.mubr.msk.f32.mxu0 %vm19_vm0, %v54_v39  ;;  %v321_v41 = vpack.c.bf16 %v63_v40, %v54_v39 }
 0x156   :  { %323 = vmatprep.subr.msk.bf16.mxu0 %vm322_vm1, %v321_v41 }
 0x157   :  { %326 = vmatpush3.bf16.xpose.msk.msra.mxu0 %vm322_vm1, %v321_v41 }
 0x15e   :  { %319 = vmatmul.mubr.msk.f32.vlgmr.msra.gmra.mrb[0].mxu0 %vm19_vm0, %v63_v40 }
 0x231   :  { %v320_v46 = vpop.f32.mrb[0].mxu0 }
 0x232   :  { %v136_v47 = vpop.f32.mrb[1].mxu0  ;;  %v153_v48 = vsel %vm151_vm2, %v320_v46, 0.0  ;;  %v171_v60 = vmul.f32 2.0, %v320_v46 }
 0x233   :  { %v152_v49 = vsel %vm150_vm3, %v136_v47, 0.0  ;;  %v158_v50 = vsel %vm154_vm4, %v153_v48, 0.0  ;;  %v170_v63 = vmul.f32 2.0, %v136_v47 }
 0x234   :  { %159 = vadd.xlane.f32.xlu1 %v158_v50  ;;  %v155_v51 = vsel %vm154_vm4, %v152_v49, 0.0 }
 0x235   :  { %156 = vadd.xlane.f32.xlu0 %v155_v51  ;;  %v161_v52 = vadd.f32 %v158_v50, %v155_v51 }
 0x237   :  { %v162_v53 = vrot.slane %v161_v52, 4 }
 0x239   :  { %v163_v54 = vadd.f32 %v162_v53, %v161_v52 }
 0x23b   :  { %v164_v55 = vrot.slane %v163_v54, 2 }
 0x23d   :  { %v165_v56 = vadd.f32 %v164_v55, %v163_v54 }
 0x23f   :  { %v166_v57 = vrot.slane %v165_v56, 1 }
 0x241   :  { %v167_v58 = vadd.f32 %v166_v57, %v165_v56 }
 0x2c1   :  { %v160_v59 = vpop.xlane.xlu1 %159 }
 0x2c2   :  { %v169_v61 = vadd.f32 %v167_v58, %v160_v59  ;;  %v157_v62 = vpop.xlane.xlu0 %156 }
 0x2c3   :  { %v168_v1 = vadd.f32 %v167_v58, %v157_v62 }
 0x2c4   :  { %v173_v2 = vsub.f32 %v169_v61, %v171_v60 }
 0x2c5   :  { %v172_v3 = vsub.f32 %v168_v1, %v170_v63 }
 0x2c6   :  { %v175_v4 = vmax.f32 %v173_v2, 1e-12 }
 0x2c7   :  { %v174_v5 = vmax.f32 %v172_v3, 1e-12 }
 0x2c8   :  { %352 = vrsqrt.f32 %v175_v4  ;;  %vm185_vm5 = vcmp.eq.f32.partialorder %v175_v4, inf  ;;  %v188_v9 = vand.u32 2147483648, %v175_v4  ;;  %vm187_vm6 = vcmp.eq.f32.partialorder %v175_v4, 0.0 }
 0x2c9   :  { %354 = vrsqrt.f32 %v174_v5  ;;  %vm178_vm7 = vcmp.eq.f32.partialorder %v174_v5, inf  ;;  %v181_v12 = vand.u32 2147483648, %v174_v5  ;;  %vm180_vm8 = vcmp.eq.f32.partialorder %v174_v5, 0.0 }
 0x2d2   :  { %v353_v6 = vpop.eup %352 }
 0x2d3   :  { %v355_v7 = vpop.eup %354  ;;  %v184_v8 = vmul.f32 %v353_v6, %v175_v4 }
 0x2d4   :  { %v177_v10 = vmul.f32 %v355_v7, %v174_v5 }
 0x2d5   :  { %v186_v11 = vsel %vm185_vm5, %v175_v4, %v184_v8 }
 0x2d6   :  { %v189_v13 = vsel %vm187_vm6, %v188_v9, %v186_v11  ;;  %v179_v14 = vsel %vm178_vm7, %v174_v5, %v177_v10 }
 0x2d7   :  { %v429_v15 = vsel %vm151_vm2, 0.0, %v189_v13  ;;  %v182_v16 = vsel %vm180_vm8, %v181_v12, %v179_v14 }
 0x2d8   :  { %210 = vrot.lane.b32.xlu1 %v429_v15, %s376_s0  ;;  %v190_v17 = vsel %vm150_vm3, 0.0, %v182_v16 }
 0x2d9   :  { %v193_v18 = vsel %vm192_vm9, %v190_v17, 0.0 }
 0x2da   :  { %194 = vadd.xlane.f32.xlu0 %v193_v18 }
 0x34a   :  { %v211_v20 = vpop.permute.xlu1 %210 }
 0x34b   :  { %v213_v21 = vsel %vm192_vm9, %v211_v20, 0.0 }
 0x34c   :  { %214 = vadd.xlane.f32.xlu0 %v213_v21 }
 0x350   :  { %256 = vmax.xlane.f32.xlu0 %v255_v22 }
 0x366   :  { %268 = vperm.xlu0 %343, %v17_v23  }
 0x367   :  { %v195_v24 = vpop.xlane.xlu0 %194 }
 0x368   :  { %v196_v25 = vrot.slane %v195_v24, 4 }
 0x36a   :  { %v197_v26 = vadd.f32 %v196_v25, %v195_v24 }
 0x36c   :  { %v198_v27 = vrot.slane %v197_v26, 2 }
 0x36e   :  { %v199_v28 = vadd.f32 %v198_v27, %v197_v26 }
 0x370   :  { %v200_v29 = vrot.slane %v199_v28, 1 }
 0x372   :  { %v201_v30 = vadd.f32 %v200_v29, %v199_v28 }
 0x374   :  { %327 = vpush %v201_v30 }
 0x3a5   :  { %s328_s17 = spop %327 }
 0x3a6   :  { %v203_v31 = vstv %s328_s17 }
 0x3a7   :  { %356 = vrcp.f32 %v203_v31 }
 0x3b1   :  { %v357_v32 = vpop.eup %356 }
 0x3b2   :  { %329 = vpush %v357_v32 }
 0x3d9   :  { %v215_v33 = vpop.xlane.xlu0 %214 }
 0x3da   :  { %v216_v34 = vrot.slane %v215_v33, 4 }
 0x3dc   :  { %v217_v35 = vadd.f32 %v216_v34, %v215_v33 }
 0x3dd   :  { %v257_v38 = vpop.xlane.xlu0 %256 }
 0x3de   :  { %v218_v36 = vrot.slane %v217_v35, 2  ;;  %v258_v47 = vsub.f32 %v403_v0, %v257_v38 }
 0x3e0   :  { %v219_v37 = vadd.f32 %v218_v36, %v217_v35  ;;  %v259_v48 = vmul.f32 1.442695, %v258_v47 }
 0x3e2   :  { %v220_v39 = vrot.slane %v219_v37, 1  ;;  %358 = vpow2.f32 %v259_v48 }
 0x3e3   :  { %s330_s2 = spop %329 }
 0x3e4   :  { %s206_s18 = smul.f32 56.0, %s330_s2  ;;  %v221_v40 = vadd.f32 %v220_v39, %v219_v37 }
 0x3e5   :  { %v269_v41 = vpop.permute.xlu0 %268 }
 0x3e6   :  { %v207_v42 = vstv %s206_s18  ;;  %331 = vpush %v221_v40  ;;  %vm270_vm10 = vcmp.eq.s32.totalorder %v419_v44, %v269_v41 }
 0x3e7   :  { %v208_v43 = vmul.f32 %v207_v42, %v190_v17  ;;  %v271_v45 = vsel %vm270_vm10, %v403_v0, 0.0 }
 0x3e8   :  { %v272_v46 = vsel %vm19_vm0, %v271_v45, 0.0 }
 0x3e9   :  { %230 = vrot.lane.b32.xlu1 %v208_v43, %s378_s19  ;;  %273 = vadd.xlane.f32.xlu0 %v272_v46 }
 0x3ec   :  { %v359_v49 = vpop.eup %358 }
 0x3ed   :  { %v261_v50 = vsel %vm19_vm0, %v359_v49, 0.0 }
 0x40d   :  { %262 = vadd.xlane.f32.xlu1 %v261_v50 }
 0x417   :  { %s332_s20 = spop %331 }
 0x418   :  { %v223_v51 = vstv %s332_s20 }
 0x419   :  { %360 = vrcp.f32 %v223_v51 }
 0x423   :  { %v361_v44 = vpop.eup %360 }
 0x424   :  { %333 = vpush %v361_v44 }
 0x455   :  { %s334_s21 = spop %333 }
 0x456   :  { %s226_s22 = smul.f32 56.0, %s334_s21 }
 0x458   :  { %v227_v52 = vstv %s226_s22 }
 0x459   :  { %v228_v53 = vmul.f32 %v227_v52, %v429_v15 }
 0x45b   :  { %v231_v54 = vpop.permute.xlu1 %230 }
 0x45c   :  { %v233_v55 = vsub.f32 %v228_v53, %v231_v54 }
 0x45e   :  { %v234_v56 = vand.u32 2147483647, %v233_v55  ;;  %v236_v0 = vmul.f32 0.5, %v233_v55 }
 0x460   :  { %v237_v57 = vmul.f32 %v236_v0, %v233_v55  ;;  %vm235_vm11 = vcmp.lt.f32.partialorder %v234_v56, 1.0  ;;  %v309_v58 = vadd.f32 -0.5, %v234_v56 }
 0x462   :  { %v239_v59 = vsel %vm235_vm11, %v237_v57, %v309_v58 }
 0x463   :  { %241 = vrot.lane.b32.xlu1 %v239_v59, %s376_s0 }
 0x476   :  { %v274_v63 = vpop.xlane.xlu0 %273 }
 0x49a   :  { %v263_v60 = vpop.xlane.xlu1 %262 }
 0x49b   :  { %362 = vlog2.f32 %v263_v60 }
 0x4a5   :  { %v363_v61 = vpop.eup %362 }
 0x4a6   :  { %v265_v62 = vmul.f32 0.6931472, %v363_v61 }
 0x4a8   :  { %v266_v1 = vadd.f32 %v265_v62, %v257_v38 }
 0x4aa   :  { %v275_v2 = vsub.f32 %v266_v1, %v274_v63 }
 0x4ac   :  { %v277_v3 = vsel %vm276_vm12, %v275_v2, 0.0 }
 0x4ad   :  { %278 = vadd.xlane.f32.xlu0 %v277_v3 }
 0x4d5   :  { %v242_v4 = vpop.permute.xlu1 %241 }
 0x4d6   :  { %v244_v5 = vsel %vm192_vm9, %v242_v4, 0.0 }
 0x4d7   :  { %245 = vadd.xlane.f32.xlu1 %v244_v5 }
 0x53a   :  { %v279_v6 = vpop.xlane.xlu0 %278 }
 0x53b   :  { %v280_v7 = vrot.slane %v279_v6, 4 }
 0x53d   :  { %v281_v8 = vadd.f32 %v280_v7, %v279_v6 }
 0x53f   :  { %v282_v9 = vrot.slane %v281_v8, 2 }
 0x541   :  { %v283_v13 = vadd.f32 %v282_v9, %v281_v8 }
 0x543   :  { %v284_v16 = vrot.slane %v283_v13, 1 }
 0x545   :  { %v285_v19 = vadd.f32 %v284_v16, %v283_v13 }
 0x564   :  { %v246_v10 = vpop.xlane.xlu1 %245 }
 0x565   :  { %v247_v11 = vrot.slane %v246_v10, 4 }
 0x567   :  { %v248_v12 = vadd.f32 %v247_v11, %v246_v10 }
 0x569   :  { %v249_v14 = vrot.slane %v248_v12, 2 }
 0x56b   :  { %v250_v15 = vadd.f32 %v249_v14, %v248_v12 }
 0x56d   :  { %v251_v17 = vrot.slane %v250_v15, 1 }
 0x56f   :  { %v252_v18 = vadd.f32 %v251_v17, %v250_v15 }
 0x571   :  { %335 = vpush %v252_v18 }
 0x572   :  { %337 = vpush %v285_v19 }
 0x5a2   :  { %s336_s23 = spop %335 }
 0x5a3   :  { %s254_s24 = smul.f32 0.015625, %s336_s23  ;;  %s338_s25 = spop %337 }
 0x5a4   :  { %s287_s26 = smul.f32 0.125, %s338_s25 }
 0x5a5   :  { %s288_s27 = smul.f32 0.5, %s254_s24 }
 0x5a7   :  { %s289_s28 = sadd.f32 %s288_s27, %s287_s26 }
 0x5a9   :  { %291 = sst [smem:[#allocation2]] %s289_s28 }
 0x5aa   :  { %373 = shalt.err (!%p370_p2)
}
 0x5ab   :  { %s379_s9 = smov [#allocation2]  }
 0x5ac   :  { %299 = dma.smem_to_hbm %s379_s9, 16, %s465_s3, [#allocation3]  }
 0x5ad   :  { %374 = dma.done.wait [#allocation3], 16  }
 0x5ae   :  { %375 = vsyncadd [#allocation3], 4294967280 }
 0x5af   :  { %303 = sfence }
 0x5b0   :  { %304 = vsyncpa [#allocation3], 1 }

</bundles_post_ra>
